<compile_context>
chip_gen: v7x
topology: tpu7x:2x2x1
jax: 0.10.0
libtpu: 0.0.40
codegen_flags: <defaults>
</compile_context>

<pallas_src>
import functools

import jax
import jax.numpy as jnp
from jax import lax
from jax.experimental import pallas as pl
from jax.experimental.pallas import tpu as pltpu


def _round_up(x, m):
    return ((x + m - 1) // m) * m


def _attention_kernel(enc_ref, dec_ref, out_ref, m_scr, l_scr, acc_scr, *, t_total):
    """One (B_BLK batch rows) x (T_BLK timesteps) tile of dot attention.

    enc_ref : (B_BLK, T_BLK, D)  encoder slab for this tile
    dec_ref : (B_BLK, D)         decoder query (same block for every T tile)
    out_ref : (B_BLK, D)         context vectors (written on the last T tile)
    scratch : online-softmax running max / denom / weighted accumulator
    """
    t_idx = pl.program_id(1)
    b_blk, t_blk, _ = enc_ref.shape

    @pl.when(t_idx == 0)
    def _init():
        m_scr[...] = jnp.full_like(m_scr, -1e30)
        l_scr[...] = jnp.zeros_like(l_scr)
        acc_scr[...] = jnp.zeros_like(acc_scr)

    enc = enc_ref[...].astype(jnp.float32)        # (B_BLK, T_BLK, D)
    dec = dec_ref[...].astype(jnp.float32)        # (B_BLK, D)

    # scores[b, t] = <dec[b], enc[b, t]>  -- VPU multiply + lane reduce,
    # no transpose of the encoder slab.
    scores = jnp.sum(enc * dec[:, None, :], axis=-1)          # (B_BLK, T_BLK) f32

    # Mask out T positions that only exist because of zero-padding.
    col = t_idx * t_blk + lax.broadcasted_iota(jnp.int32, (b_blk, t_blk), 1)
    scores = jnp.where(col < t_total, scores, jnp.float32(-1e30))

    # Online (flash-style) softmax accumulation across T tiles.
    m_prev = m_scr[...]                                        # (B_BLK, 1)
    m_new = jnp.maximum(m_prev, jnp.max(scores, axis=-1, keepdims=True))
    alpha = jnp.exp(m_prev - m_new)                            # (B_BLK, 1)
    p = jnp.exp(scores - m_new)                                # (B_BLK, T_BLK)

    l_scr[...] = alpha * l_scr[...] + jnp.sum(p, axis=-1, keepdims=True)
    acc_scr[...] = alpha * acc_scr[...] + jnp.sum(p[:, :, None] * enc, axis=1)
    m_scr[...] = m_new

    @pl.when(t_idx == pl.num_programs(1) - 1)
    def _finalize():
        l = l_scr[...]
        inv_l = pl.reciprocal(l, approx=True)        # EUP slot (otherwise idle)
        inv_l = inv_l * (2.0 - l * inv_l)            # one Newton step -> ~f32 exact
        out_ref[...] = (acc_scr[...] * inv_l).astype(out_ref.dtype)


def attention_dot(encoder_out, decoder_out, *, b_blk=8, max_t_blk=2048,
                  enc_buf_bytes=8 * 1024 * 1024):
    """Dot-product attention (n_head=1) matching miniasr Attention.forward.

    encoder_out: (B, T, D), decoder_out: (B, 1, D) -> (B, D)
    """
    B, T, D = encoder_out.shape
    assert decoder_out.shape == (B, 1, D), decoder_out.shape
    out_dtype = encoder_out.dtype
    itemsize = jnp.dtype(encoder_out.dtype).itemsize

    dec2d = decoder_out[:, 0, :]                               # (B, D)

    # ---- pick padded / tiled shapes ------------------------------------
    d_pad = _round_up(D, 128)          # lane-dense loads & stores
    b_pad = _round_up(B, b_blk)        # sublane-dense output tiles

    # Largest T tile such that one double-buffered encoder block stays well
    # inside the scoped-VMEM default on every TPU generation (incl. v7x).
    t_blk = enc_buf_bytes // (b_blk * d_pad * itemsize)
    t_blk = max(8, (min(t_blk, max_t_blk) // 8) * 8)
    t_blk = min(t_blk, _round_up(T, 8))
    t_pad = _round_up(T, t_blk)

    if (b_pad, t_pad, d_pad) != (B, T, D):
        encoder_out = jnp.pad(
            encoder_out, ((0, b_pad - B), (0, t_pad - T), (0, d_pad - D)))
    if (b_pad, d_pad) != (B, D):
        dec2d = jnp.pad(dec2d, ((0, b_pad - B), (0, d_pad - D)))

    grid = (b_pad // b_blk, t_pad // t_blk)

    out = pl.pallas_call(
        functools.partial(_attention_kernel, t_total=T),
        out_shape=jax.ShapeDtypeStruct((b_pad, d_pad), out_dtype),
        grid_spec=pltpu.PrefetchScalarGridSpec(
            num_scalar_prefetch=0,
            grid=grid,
            in_specs=[
                pl.BlockSpec((b_blk, t_blk, d_pad), lambda b, t: (b, t, 0)),
                pl.BlockSpec((b_blk, d_pad), lambda b, t: (b, 0)),
            ],
            out_specs=pl.BlockSpec((b_blk, d_pad), lambda b, t: (b, 0)),
            scratch_shapes=[
                pltpu.VMEM((b_blk, 1), jnp.float32),      # running max
                pltpu.VMEM((b_blk, 1), jnp.float32),      # running denom
                pltpu.VMEM((b_blk, d_pad), jnp.float32),  # weighted-sum acc
            ],
        ),
        compiler_params=pltpu.CompilerParams(
            dimension_semantics=("parallel", "arbitrary"),
        ),
    )(encoder_out, dec2d)

    return out[:B, :D]


def attention_dot_ref(encoder_out, decoder_out):
    """Pure-JAX reference mirroring the PyTorch forward."""
    align = jnp.einsum("bod,btd->bot", decoder_out, encoder_out)[:, 0, :]  # (B, T)
    attn = jax.nn.softmax(align, axis=-1)
    return jnp.sum(encoder_out * attn[:, :, None], axis=1)                 # (B, D)


if __name__ == "__main__":
    key = jax.random.PRNGKey(0)

    # Small shapes consistent with the module forward; the second case
    # exercises the padding + T-masking path.
    for (B, T, D) in [(2, 8, 32), (3, 37, 96)]:
        k_enc, k_dec, key = jax.random.split(key, 3)
        encoder_out = jax.random.normal(k_enc, (B, T, D), dtype=jnp.float32)
        decoder_out = jax.random.normal(k_dec, (B, 1, D), dtype=jnp.float32)

        out = jax.block_until_ready(attention_dot(encoder_out, decoder_out))
        ref = attention_dot_ref(encoder_out, decoder_out)

        assert out.shape == (B, D)
        assert jnp.allclose(out, ref, atol=1e-4, rtol=1e-4), (
            f"mismatch vs reference for shape {(B, T, D)}")

    print("KERNEL_OK")
</pallas_src>

<mosaic_0001>
module attributes {stable_mosaic.version = 11 : i64} {
  func.func @_attention_kernel(%arg0: i32, %arg1: i32, %arg2: memref<8x8x128xf32, #tpu.memory_space<vmem>>, %arg3: memref<8x128xf32, #tpu.memory_space<vmem>>, %arg4: memref<8x128xf32, #tpu.memory_space<vmem>>, %arg5: memref<8x1xf32, #tpu.memory_space<vmem>>, %arg6: memref<8x1xf32, #tpu.memory_space<vmem>>, %arg7: memref<8x128xf32, #tpu.memory_space<vmem>>) attributes {dimension_semantics = [#tpu.dimension_semantics<parallel>, #tpu.dimension_semantics<arbitrary>], iteration_bounds = array<i64: 1, 1>, scalar_prefetch = 0 : i64, scratch_operands = 3 : i64, tpu.core_type = #tpu.core_type<tc>, window_params = [{transform_indices = @transform_0, window_bounds = array<i64: 8, 8, 128>}, {transform_indices = @transform_1, window_bounds = array<i64: 8, 128>}, {transform_indices = @transform_2, window_bounds = array<i64: 8, 128>}]} {
    %c0_i32 = arith.constant 0 : i32
    %0 = arith.cmpi eq, %arg1, %c0_i32 : i32
    %1 = arith.extui %0 : i1 to i32
    %c0_i32_0 = arith.constant 0 : i32
    %2 = arith.cmpi ne, %1, %c0_i32_0 : i32
    scf.if %2 {
      %cst_24 = arith.constant -1.000000e+30 : f32
      %45 = vector.broadcast %cst_24 : f32 to vector<8x1xf32>
      %c0_25 = arith.constant 0 : index
      %c0_26 = arith.constant 0 : index
      %46 = vector.load %arg5[%c0_25, %c0_26] : memref<8x1xf32, #tpu.memory_space<vmem>>, vector<8x1xf32>
      tpu.vector_store %arg5[%c0_25, %c0_26], %45 {strides = array<i32>} : memref<8x1xf32, #tpu.memory_space<vmem>>, vector<8x1xf32>,
      %cst_27 = arith.constant 0.000000e+00 : f32
      %47 = vector.broadcast %cst_27 : f32 to vector<8x1xf32>
      %c0_28 = arith.constant 0 : index
      %c0_29 = arith.constant 0 : index
      %48 = vector.load %arg6[%c0_28, %c0_29] : memref<8x1xf32, #tpu.memory_space<vmem>>, vector<8x1xf32>
      tpu.vector_store %arg6[%c0_28, %c0_29], %47 {strides = array<i32>} : memref<8x1xf32, #tpu.memory_space<vmem>>, vector<8x1xf32>,
      %cst_30 = arith.constant 0.000000e+00 : f32
      %49 = vector.broadcast %cst_30 : f32 to vector<8x128xf32>
      %c0_31 = arith.constant 0 : index
      %c0_32 = arith.constant 0 : index
      %50 = vector.load %arg7[%c0_31, %c0_32] : memref<8x128xf32, #tpu.memory_space<vmem>>, vector<8x128xf32>
      tpu.vector_store %arg7[%c0_31, %c0_32], %49 {strides = array<i32>} : memref<8x128xf32, #tpu.memory_space<vmem>>, vector<8x128xf32>,
    } else {
    }
    %c0 = arith.constant 0 : index
    %c0_1 = arith.constant 0 : index
    %c0_2 = arith.constant 0 : index
    %3 = vector.load %arg2[%c0, %c0_1, %c0_2] : memref<8x8x128xf32, #tpu.memory_space<vmem>>, vector<8x8x128xf32>
    %c0_3 = arith.constant 0 : index
    %c0_4 = arith.constant 0 : index
    %4 = vector.load %arg3[%c0_3, %c0_4] : memref<8x128xf32, #tpu.memory_space<vmem>>, vector<8x128xf32>
    %5 = vector.shape_cast %4 : vector<8x128xf32> to vector<8x1x128xf32>
    %6 = vector.broadcast %5 : vector<8x1x128xf32> to vector<8x8x128xf32>
    %7 = arith.mulf %3, %6 : vector<8x8x128xf32>
    %cst = arith.constant dense<0.000000e+00> : vector<8x8xf32>
    %8 = vector.multi_reduction <add>, %7, %cst [2] : vector<8x8x128xf32> to vector<8x8xf32>
    %c8_i32 = arith.constant 8 : i32
    %9 = arith.muli %arg1, %c8_i32 : i32
    %10 = tpu.iota {dimensions = array<i32: 1>} : vector<8x8xi32>
    %11 = vector.broadcast %9 : i32 to vector<8x8xi32>
    %12 = arith.addi %11, %10 : vector<8x8xi32>
    %c8_i32_5 = arith.constant 8 : i32
    %13 = vector.broadcast %c8_i32_5 : i32 to vector<8x8xi32>
    %14 = arith.cmpi slt, %12, %13 : vector<8x8xi32>
    %cst_6 = arith.constant -1.000000e+30 : f32
    %15 = vector.broadcast %cst_6 : f32 to vector<8x8xf32>
    %16 = arith.select %14, %8, %15 : vector<8x8xi1>, vector<8x8xf32>
    %c0_7 = arith.constant 0 : index
    %c0_8 = arith.constant 0 : index
    %17 = vector.load %arg5[%c0_7, %c0_8] : memref<8x1xf32, #tpu.memory_space<vmem>>, vector<8x1xf32>
    %cst_9 = arith.constant dense<0xFF800000> : vector<8xf32>
    %18 = vector.multi_reduction <maximumf>, %16, %cst_9 [1] : vector<8x8xf32> to vector<8xf32>
    %19 = vector.shape_cast %18 : vector<8xf32> to vector<8x1xf32>
    %20 = arith.maximumf %17, %19 : vector<8x1xf32>
    %21 = arith.subf %17, %20 : vector<8x1xf32>
    %22 = math.exp %21 : vector<8x1xf32>
    %23 = vector.broadcast %20 : vector<8x1xf32> to vector<8x8xf32>
    %24 = arith.subf %16, %23 : vector<8x8xf32>
    %25 = math.exp %24 : vector<8x8xf32>
    %c0_10 = arith.constant 0 : index
    %c0_11 = arith.constant 0 : index
    %26 = vector.load %arg6[%c0_10, %c0_11] : memref<8x1xf32, #tpu.memory_space<vmem>>, vector<8x1xf32>
    %27 = arith.mulf %22, %26 : vector<8x1xf32>
    %cst_12 = arith.constant dense<0.000000e+00> : vector<8xf32>
    %28 = vector.multi_reduction <add>, %25, %cst_12 [1] : vector<8x8xf32> to vector<8xf32>
    %29 = vector.shape_cast %28 : vector<8xf32> to vector<8x1xf32>
    %30 = arith.addf %27, %29 : vector<8x1xf32>
    %c0_13 = arith.constant 0 : index
    %c0_14 = arith.constant 0 : index
    %31 = vector.load %arg6[%c0_13, %c0_14] : memref<8x1xf32, #tpu.memory_space<vmem>>, vector<8x1xf32>
    tpu.vector_store %arg6[%c0_13, %c0_14], %30 {strides = array<i32>} : memref<8x1xf32, #tpu.memory_space<vmem>>, vector<8x1xf32>,
    %c0_15 = arith.constant 0 : index
    %c0_16 = arith.constant 0 : index
    %32 = vector.load %arg7[%c0_15, %c0_16] : memref<8x128xf32, #tpu.memory_space<vmem>>, vector<8x128xf32>
    %33 = vector.broadcast %22 : vector<8x1xf32> to vector<8x128xf32>
    %34 = arith.mulf %33, %32 : vector<8x128xf32>
    %35 = vector.shape_cast %25 : vector<8x8xf32> to vector<8x8x1xf32>
    %36 = vector.broadcast %35 : vector<8x8x1xf32> to vector<8x8x128xf32>
    %37 = arith.mulf %36, %3 : vector<8x8x128xf32>
    %cst_17 = arith.constant dense<0.000000e+00> : vector<8x128xf32>
    %38 = vector.multi_reduction <add>, %37, %cst_17 [1] : vector<8x8x128xf32> to vector<8x128xf32>
    %39 = arith.addf %34, %38 : vector<8x128xf32>
    %c0_18 = arith.constant 0 : index
    %c0_19 = arith.constant 0 : index
    %40 = vector.load %arg7[%c0_18, %c0_19] : memref<8x128xf32, #tpu.memory_space<vmem>>, vector<8x128xf32>
    tpu.vector_store %arg7[%c0_18, %c0_19], %39 {strides = array<i32>} : memref<8x128xf32, #tpu.memory_space<vmem>>, vector<8x128xf32>,
    %c0_20 = arith.constant 0 : index
    %c0_21 = arith.constant 0 : index
    %41 = vector.load %arg5[%c0_20, %c0_21] : memref<8x1xf32, #tpu.memory_space<vmem>>, vector<8x1xf32>
    tpu.vector_store %arg5[%c0_20, %c0_21], %20 {strides = array<i32>} : memref<8x1xf32, #tpu.memory_space<vmem>>, vector<8x1xf32>,
    %c0_i32_22 = arith.constant 0 : i32
    %42 = arith.cmpi eq, %arg1, %c0_i32_22 : i32
    %43 = arith.extui %42 : i1 to i32
    %c0_i32_23 = arith.constant 0 : i32
    %44 = arith.cmpi ne, %43, %c0_i32_23 : i32
    scf.if %44 {
      %c0_24 = arith.constant 0 : index
      %c0_25 = arith.constant 0 : index
      %45 = vector.load %arg6[%c0_24, %c0_25] : memref<8x1xf32, #tpu.memory_space<vmem>>, vector<8x1xf32>
      %46 = tpu.reciprocal %45 {approx = true} : vector<8x1xf32> -> vector<8x1xf32>
      %47 = arith.mulf %45, %46 : vector<8x1xf32>
      %cst_26 = arith.constant 2.000000e+00 : f32
      %48 = vector.broadcast %cst_26 : f32 to vector<8x1xf32>
      %49 = arith.subf %48, %47 : vector<8x1xf32>
      %50 = arith.mulf %46, %49 : vector<8x1xf32>
      %c0_27 = arith.constant 0 : index
      %c0_28 = arith.constant 0 : index
      %51 = vector.load %arg7[%c0_27, %c0_28] : memref<8x128xf32, #tpu.memory_space<vmem>>, vector<8x128xf32>
      %52 = vector.broadcast %50 : vector<8x1xf32> to vector<8x128xf32>
      %53 = arith.mulf %51, %52 : vector<8x128xf32>
      %c0_29 = arith.constant 0 : index
      %c0_30 = arith.constant 0 : index
      %54 = vector.load %arg4[%c0_29, %c0_30] : memref<8x128xf32, #tpu.memory_space<vmem>>, vector<8x128xf32>
      tpu.vector_store %arg4[%c0_29, %c0_30], %53 {strides = array<i32>} : memref<8x128xf32, #tpu.memory_space<vmem>>, vector<8x128xf32>,
    } else {
    }
    return
  }
  func.func @transform_0(%arg0: i32, %arg1: i32) -> (i32, i32, i32) {
    %c0_i32 = arith.constant 0 : i32
    %c0_i32_0 = arith.constant 0 : i32
    return %arg0, %arg1, %c0_i32 : i32, i32, i32
  }
  func.func @transform_1(%arg0: i32, %arg1: i32) -> (i32, i32) {
    %c0_i32 = arith.constant 0 : i32
    %c0_i32_0 = arith.constant 0 : i32
    return %arg0, %c0_i32 : i32, i32
  }
  func.func @transform_2(%arg0: i32, %arg1: i32) -> (i32, i32) {
    %c0_i32 = arith.constant 0 : i32
    %c0_i32_0 = arith.constant 0 : i32
    return %arg0, %c0_i32 : i32, i32
  }
}

</mosaic_0001>

<bundles_post_ra>
// kernel: tpu_custom_call.1
= control target key start
LH: loop header
LB: loop body
LE: loop exit
PB: predicated region body
PF: predicated region fallthrough
CT: control target
= control target key end

     0   :  { %7 = vsyncpa [#allocation6], 0  ;;  %s651_s0 = inlined_call_operand.hbm [shape: f32[8,8,128], index: 0, kind: input, shape index: {}]   ;;  %s652_s1 = inlined_call_operand.hbm [shape: f32[8,128], index: 1, kind: input, shape index: {}]   ;;  %s653_s2 = inlined_call_operand.hbm [shape: f32[8,128], index: 2, kind: output, shape index: {}]  }
   0x1   :  { %8 = vsyncpa [#allocation9], 0 }
   0x2   :  { %9 = vsyncpa [#allocation7], 0  ;;  %s516_s9 = smov [#allocation5]   ;;  %s444_s13 = scalar_lea.hbm %s651_s0, 1024 }
   0x3   :  { %s15_s10 = sshll.u32 %s516_s9, 4  ;;  %p445_p0 = scmp.ne.s32.totalorder %s651_s0, %s444_s13  ;;  %s16_s10 = int_to_ptr.vmem [resolvable:$true] %s15_s10 }
   0x4   :  { %p448_p1 = scmp.lt.u32.totalorder %s444_s13, %s651_s0 }
   0x6   :  { %p450_p2 = pnand %p448_p1, %p445_p0 }
   0x8   :  { %453 = shalt.err (!%p450_p2)
}
   0x9   :  { %s454_s18 = scalar_lea.vmem %s16_s10, 1024  ;;  %p459_p4 = scmp.lt.s32.totalorder %s16_s10, %s16_s10 }
   0xa   :  { %p455_p3 = scmp.ne.s32.totalorder %s16_s10, %s454_s18  ;;  %p460_p5 = scmp.lt.s32.totalorder %s454_s18, %s454_s18 }
   0xc   :  { %p461_p6 = por %p460_p5, %p459_p4 }
   0xe   :  { %p462_p7 = pnand %p461_p6, %p455_p3 }
  0x10   :  { %465 = shalt.err (!%p462_p7)
}
  0x11   :  { %s517_s19 = smov 128   ;;  %s518_s20 = smov 8  }
  0x12   :  { %21 = dma.hbm_to_vmem [thread:$0]  %s651_s0, 1024, %s16_s10, [#allocation6], %s517_s19, %s517_s19, %s518_s20  }
  0x13   :  { %s519_s23 = smov [#allocation8]   ;;  %s466_s27 = scalar_lea.hbm %s652_s1, 128 }
  0x14   :  { %s28_s24 = sshll.u32 %s519_s23, 4  ;;  %p467_p8 = scmp.ne.s32.totalorder %s652_s1, %s466_s27  ;;  %s29_s24 = int_to_ptr.vmem [resolvable:$true] %s28_s24 }
  0x15   :  { %p470_p9 = scmp.lt.u32.totalorder %s466_s27, %s652_s1 }
  0x17   :  { %p472_p10 = pnand %p470_p9, %p467_p8 }
  0x19   :  { %475 = shalt.err (!%p472_p10)
}
  0x1a   :  { %s476_s4 = scalar_lea.vmem %s29_s24, 128  ;;  %p481_p12 = scmp.lt.s32.totalorder %s29_s24, %s29_s24 }
  0x1b   :  { %p477_p11 = scmp.ne.s32.totalorder %s29_s24, %s476_s4  ;;  %p482_p13 = scmp.lt.s32.totalorder %s476_s4, %s476_s4 }
  0x1d   :  { %p483_p0 = por %p482_p13, %p481_p12 }
  0x1f   :  { %p484_p1 = pnand %p483_p0, %p477_p11 }
  0x21   :  { %487 = shalt.err (!%p484_p1)
}
  0x22   :  { %31 = dma.hbm_to_vmem [thread:$0]  %s652_s1, 128, %s29_s24, [#allocation9]  }
  0x23   :  { %510 = dma.done.wait [#allocation6], 1024  }
  0x24   :  { %511 = vsyncadd [#allocation6], 4294966272 }
  0x25   :  { %512 = dma.done.wait [#allocation9], 128  }
  0x26   :  { %513 = vsyncadd [#allocation9], 4294967168  ;;  %v60_v0 = vlaneseq  ;;  %v520_v1 = vmov 1966171168   ;;  %v54_v6 = vld [vmem:[#allocation8] sm:$0xff]  ;;  %v573_v18 = vld [vmem:[#allocation5 + $0x10] sm:$0xff] }
  0x27   :  { %v58_v2 = vunpack.c.l.s4 %v520_v1  ;;  %v56_v7 = vcombine.high %v54_v6, %v54_v6  ;;  %v570_v13 = vld [vmem:[#allocation5] sm:$0xff]  ;;  %v575_v19 = vld [vmem:[#allocation5 + $0x8] sm:$0xff]  ;;  %v580_v25 = vld [vmem:[#allocation5 + $0x18] sm:$0xff]  ;;  %vm42_vm0 = vcmask 7168   ;;  %v521_v45 = vmov -1e+30  }
  0x28   :  { %v564_v3 = vshrl.u32 %v60_v0, 7  ;;  %v586_v32 = vld [vmem:[#allocation5 + $0x20] sm:$0xff]  ;;  %v590_v36 = vld [vmem:[#allocation5 + $0x28] sm:$0xff]  ;;  %v594_v39 = vld [vmem:[#allocation5 + $0x30] sm:$0xff]  ;;  %43 = vst.msk [vmem:[#allocation2] sm:$0xff] %vm42_vm0, %v521_v45  ;;  %v171_v46 = vand.u32 127, %v60_v0 }
  0x29   :  { %v59_v4 = vunpack.c.0.s8 %v58_v2  ;;  %v598_v42 = vld [vmem:[#allocation5 + $0x38] sm:$0xff]  ;;  %vm215_vm1 = vcmask 1041409   ;;  %vm217_vm2 = vcmask 1042434   ;;  %vm219_vm3 = vcmask 1043459   ;;  %s524_s1 = smov [#allocation10]  }
  0x2a   :  { %v568_v9 = vsub.s32 0, %v564_v3  ;;  %v185_v48 = vsub.s32 %v171_v46, %v564_v3  ;;  %vm221_vm4 = vcmask 1044484   ;;  %vm223_vm5 = vcmask 1045509   ;;  %s416_s6 = sshll.u32 %s524_s1, 4  ;;  %s417_s6 = int_to_ptr.vmem [resolvable:$true] %s416_s6 }
  0x2b   :  { %v62_v5 = vsub.s32 %v59_v4, %v564_v3  ;;  %vm225_vm6 = vcmask 1046534   ;;  %vm227_vm7 = vcmask 1047559   ;;  %vm174_vm8 = vcmp.lt.s32.totalorder %v171_v46, 8  ;;  %s488_s7 = scalar_lea.vmem %s417_s6, 128  ;;  %p493_p3 = scmp.lt.s32.totalorder %s417_s6, %s417_s6 }
  0x2c   :  { %vm232_vm9 = vcmask 64512   ;;  %v314_v45 = vsub.s32 7, %v564_v3  ;;  %p489_p2 = scmp.ne.s32.totalorder %s417_s6, %s488_s7  ;;  %p494_p4 = scmp.lt.s32.totalorder %s488_s7, %s488_s7 }
  0x2d   :  { %v63_v8 = vrot.slane %v54_v6, %v62_v5  ;;  %v70_v12 = vrot.slane %v56_v7, %v62_v5 }
  0x2e   :  { %p495_p5 = por %p494_p4, %p493_p3 }
  0x2f   :  { %v79_v10 = vrot.slane %v63_v8, %v62_v5  ;;  %v71_v11 = vcombine.high %v63_v8, %v63_v8  ;;  %v86_v17 = vrot.slane %v70_v12, %v62_v5  ;;  %v72_v20 = vcombine.high %v70_v12, %v70_v12 }
  0x30   :  { %v523_v12 = vmov 0.0   ;;  %p496_p6 = pnand %p495_p5, %p489_p2 }
  0x31   :  { %v108_v14 = vrot.slane %v79_v10, %v568_v9  ;;  %v101_v15 = vcombine.high %v79_v10, %v79_v10  ;;  %v93_v16 = vrot.slane %v71_v11, %v62_v5  ;;  %v124_v26 = vrot.slane %v86_v17, %v568_v9  ;;  %44 = vst.msk [vmem:[#allocation3] sm:$0xff] %vm42_vm0, %v523_v12 }
  0x32   :  { %v100_v27 = vrot.slane %v72_v20, %v62_v5  ;;  %v102_v31 = vcombine.high %v86_v17, %v86_v17  ;;  %v522_v11 = vmov 0  }
  0x33   :  { %v145_v21 = vmul.f32 %v108_v14, %v570_v13  ;;  %v116_v22 = vrot.slane %v101_v15, %v568_v9  ;;  %v112_v23 = vrot.slane %v93_v16, %v568_v9  ;;  %v103_v24 = vcombine.high %v93_v16, %v93_v16  ;;  %435 = vset.pattern.permute.xlu1 %v522_v11  ;;  %v231_v14 = vld [vmem:[#allocation2] sm:$0xff] }
  0x34   :  { %v128_v34 = vrot.slane %v100_v27, %v568_v9  ;;  %v104_v35 = vcombine.high %v100_v27, %v100_v27  ;;  %v149_v37 = vmul.f32 %v124_v26, %v586_v32  ;;  %v132_v38 = vrot.slane %v102_v31, %v568_v9  ;;  %436 = vset.pattern.permute.xlu0 %v522_v11 }
  0x35   :  { %153 = vadd.xlane.f32.xlu0 %v145_v21  ;;  %v147_v28 = vmul.f32 %v116_v22, %v573_v18  ;;  %v146_v29 = vmul.f32 %v112_v23, %v575_v19  ;;  %v120_v30 = vrot.slane %v103_v24, %v568_v9  ;;  %v272_v23 = vsub.s32 1, %v564_v3 }
  0x36   :  { %v150_v40 = vmul.f32 %v128_v34, %v590_v36  ;;  %v136_v41 = vrot.slane %v104_v35, %v568_v9  ;;  %v151_v43 = vmul.f32 %v132_v38, %v594_v39  ;;  %v293_v34 = vsub.s32 4, %v564_v3 }
  0x37   :  { %157 = vadd.xlane.f32.xlu1 %v147_v28  ;;  %v148_v33 = vmul.f32 %v120_v30, %v580_v25  ;;  %v279_v28 = vsub.s32 2, %v564_v3  ;;  %v286_v30 = vsub.s32 3, %v564_v3 }
  0x38   :  { %v152_v44 = vmul.f32 %v136_v41, %v598_v42 }
  0x39   :  { %155 = vadd.xlane.f32.xlu0 %v146_v29 }
  0x3b   :  { %159 = vadd.xlane.f32.xlu1 %v148_v33 }
  0x3d   :  { %161 = vadd.xlane.f32.xlu0 %v149_v37  ;;  %v307_v37 = vsub.s32 6, %v564_v3 }
  0x3f   :  { %163 = vadd.xlane.f32.xlu1 %v150_v40 }
  0x41   :  { %165 = vadd.xlane.f32.xlu0 %v151_v43  ;;  %v300_v43 = vsub.s32 5, %v564_v3 }
  0x43   :  { %167 = vadd.xlane.f32.xlu1 %v152_v44 }
  0xc2   :  { %v154_v47 = vpop.xlane.xlu0 %153 }
  0xc3   :  { %v186_v51 = vrot.slane %v154_v47, %v185_v48  ;;  %v248_v47 = vld [vmem:[#allocation3] sm:$0xff] }
  0xc4   :  { %v158_v49 = vpop.xlane.xlu1 %157 }
  0xc5   :  { %v194_v53 = vrot.slane %v158_v49, %v185_v48 }
  0xc6   :  { %v156_v50 = vpop.xlane.xlu0 %155 }
  0xc7   :  { %v190_v52 = vrot.slane %v156_v50, %v185_v48 }
  0xc8   :  { %v160_v54 = vpop.xlane.xlu1 %159 }
  0xc9   :  { %v216_v55 = vsel %vm215_vm1, %v190_v52, %v186_v51  ;;  %v198_v56 = vrot.slane %v160_v54, %v185_v48 }
  0xca   :  { %v218_v57 = vsel %vm217_vm2, %v194_v53, %v216_v55  ;;  %v162_v58 = vpop.xlane.xlu0 %161 }
  0xcb   :  { %v220_v59 = vsel %vm219_vm3, %v198_v56, %v218_v57  ;;  %v202_v60 = vrot.slane %v162_v58, %v185_v48 }
  0xcc   :  { %v164_v61 = vpop.xlane.xlu1 %163 }
  0xcd   :  { %v222_v62 = vsel %vm221_vm4, %v202_v60, %v220_v59  ;;  %v206_v63 = vrot.slane %v164_v61, %v185_v48 }
  0xce   :  { %v166_v0 = vpop.xlane.xlu0 %165 }
  0xcf   :  { %v224_v1 = vsel %vm223_vm5, %v206_v63, %v222_v62  ;;  %v210_v2 = vrot.slane %v166_v0, %v185_v48 }
  0xd0   :  { %v168_v4 = vpop.xlane.xlu1 %167 }
  0xd1   :  { %v214_v5 = vrot.slane %v168_v4, %v185_v48  ;;  %v226_v6 = vsel %vm225_vm6, %v210_v2, %v224_v1 }
  0xd3   :  { %v228_v7 = vsel %vm227_vm7, %v214_v5, %v226_v6 }
  0xd4   :  { %v230_v8 = vsel %vm174_vm8, %v228_v7, -1e+30 }
  0xd5   :  { %v233_v10 = vsel %vm232_vm9, %v230_v8, -inf }
  0xd6   :  { %234 = vmax.xlane.f32.xlu0 %v233_v10 }
 0x163   :  { %v235_v15 = vpop.xlane.xlu0 %234 }
 0x164   :  { %v236_v16 = vmax.f32 %v231_v14, %v235_v15 }
 0x166   :  { %v237_v17 = vsub.f32 %v231_v14, %v236_v16  ;;  %393 = vst.msk [vmem:[#allocation2] sm:$0xff] %vm42_vm0, %v236_v16  ;;  %242 = vperm.xlu1 %435, %v236_v16  }
 0x168   :  { %v238_v31 = vmul.f32 1.442695, %v237_v17 }
 0x1e5   :  { %v243_v20 = vpop.permute.xlu1 %242 }
 0x1e6   :  { %v245_v21 = vsub.f32 %v230_v8, %v243_v20 }
 0x1e8   :  { %v246_v22 = vmul.f32 1.442695, %v245_v21 }
 0x1ea   :  { %438 = vpow2.f32 %v246_v22 }
 0x1eb   :  { %440 = vpow2.f32 %v238_v31 }
 0x1f4   :  { %v439_v24 = vpop.eup %438 }
 0x1f5   :  { %v250_v26 = vsel %vm232_vm9, %v439_v24, 0.0  ;;  %v273_v27 = vrot.slane %v439_v24, %v272_v23  ;;  %v280_v29 = vrot.slane %v439_v24, %v279_v28  ;;  %v287_v33 = vrot.slane %v439_v24, %v286_v30  ;;  %v441_v40 = vpop.eup %440 }
 0x1f6   :  { %251 = vadd.xlane.f32.xlu0 %v250_v26  ;;  %v294_v35 = vrot.slane %v439_v24, %v293_v34  ;;  %v308_v38 = vrot.slane %v439_v24, %v307_v37  ;;  %v266_v41 = vrot.slane %v439_v24, %v568_v9  ;;  %v301_v44 = vrot.slane %v439_v24, %v300_v43 }
 0x1f7   :  { %275 = vbcast.lane.b32.xlu1 %v273_v27, 256  ;;  %v315_v46 = vrot.slane %v439_v24, %v314_v45  ;;  %v249_v48 = vmul.f32 %v441_v40, %v248_v47 }
 0x1fb   :  { %282 = vbcast.lane.b32.xlu1 %v280_v29, 256 }
 0x1ff   :  { %289 = vbcast.lane.b32.xlu1 %v287_v33, 256 }
 0x203   :  { %296 = vbcast.lane.b32.xlu1 %v294_v35, 256 }
 0x207   :  { %310 = vbcast.lane.b32.xlu1 %v308_v38, 256 }
 0x20b   :  { %259 = vperm.xlu1 %435, %v441_v40  }
 0x20c   :  { %268 = vbcast.lane.b32.xlu0 %v266_v41, 256 }
 0x210   :  { %303 = vbcast.lane.b32.xlu0 %v301_v44, 256 }
 0x214   :  { %317 = vbcast.lane.b32.xlu0 %v315_v46, 256 }
 0x269   :  { %v276_v55 = vpop.permute.xlu1 %275 }
 0x26a   :  { %v320_v58 = vmul.f32 %v276_v55, %v575_v19 }
 0x26c   :  { %v333_v62 = vrot.slane %v320_v58, 4 }
 0x26d   :  { %v283_v56 = vpop.permute.xlu1 %282 }
 0x26e   :  { %v321_v61 = vmul.f32 %v283_v56, %v573_v18  ;;  %v334_v5 = vadd.f32 %v333_v62, %v320_v58 }
 0x270   :  { %v339_v4 = vrot.slane %v321_v61, 4  ;;  %v335_v11 = vrot.slane %v334_v5, 2 }
 0x271   :  { %v290_v59 = vpop.permute.xlu1 %289 }
 0x272   :  { %v322_v0 = vmul.f32 %v290_v59, %v580_v25  ;;  %v340_v10 = vadd.f32 %v339_v4, %v321_v61  ;;  %v336_v21 = vadd.f32 %v335_v11, %v334_v5 }
 0x274   :  { %v345_v7 = vrot.slane %v322_v0, 4  ;;  %v341_v17 = vrot.slane %v340_v10, 2  ;;  %v337_v28 = vrot.slane %v336_v21, 1 }
 0x275   :  { %v297_v1 = vpop.permute.xlu1 %296 }
 0x276   :  { %v323_v6 = vmul.f32 %v297_v1, %v586_v32  ;;  %v346_v18 = vadd.f32 %v345_v7, %v322_v0 }
 0x278   :  { %v351_v14 = vrot.slane %v323_v6, 4  ;;  %v347_v32 = vrot.slane %v346_v18, 2 }
 0x279   :  { %v311_v12 = vpop.permute.xlu1 %310 }
 0x27a   :  { %v325_v20 = vmul.f32 %v311_v12, %v594_v39  ;;  %v352_v22 = vadd.f32 %v351_v14, %v323_v6  ;;  %v348_v30 = vadd.f32 %v347_v32, %v346_v18 }
 0x27c   :  { %v363_v27 = vrot.slane %v325_v20, 4  ;;  %v353_v29 = vrot.slane %v352_v22, 2  ;;  %v349_v40 = vrot.slane %v348_v30, 1 }
 0x27e   :  { %v364_v37 = vadd.f32 %v363_v27, %v325_v20  ;;  %v354_v38 = vadd.f32 %v353_v29, %v352_v22 }
 0x280   :  { %v365_v45 = vrot.slane %v364_v37, 2  ;;  %v355_v46 = vrot.slane %v354_v38, 1 }
 0x283   :  { %v252_v49 = vpop.xlane.xlu0 %251 }
 0x284   :  { %v253_v50 = vadd.f32 %v252_v49, %v249_v48  ;;  %v350_v48 = vadd.f32 %v349_v40, %v348_v30 }
 0x286   :  { %255 = vst.msk [vmem:[#allocation3] sm:$0xff] %vm42_vm0, %v253_v50 }
 0x287   :  { %v269_v57 = vpop.permute.xlu0 %268 }
 0x288   :  { %v319_v3 = vmul.f32 %v269_v57, %v570_v13 }
 0x28a   :  { %v327_v60 = vrot.slane %v319_v3, 4  ;;  %v260_v59 = vpop.permute.xlu1 %259 }
 0x28b   :  { %v304_v63 = vpop.permute.xlu0 %303  ;;  %v262_v62 = vmul.f32 0.0, %v260_v59 }
 0x28c   :  { %v328_v2 = vadd.f32 %v327_v60, %v319_v3  ;;  %v324_v13 = vmul.f32 %v304_v63, %v590_v36  ;;  %v342_v36 = vadd.f32 %v341_v17, %v340_v10 }
 0x28d   :  { %v397_v51 = vld [vmem:[#allocation3] sm:$0xff] }
 0x28e   :  { %442 = vrcp.f32 %v397_v51  ;;  %v329_v8 = vrot.slane %v328_v2, 2  ;;  %v357_v16 = vrot.slane %v324_v13, 4  ;;  %v343_v35 = vrot.slane %v342_v36, 1 }
 0x28f   :  { %v318_v19 = vpop.permute.xlu0 %317 }
 0x290   :  { %v330_v15 = vadd.f32 %v329_v8, %v328_v2  ;;  %v326_v25 = vmul.f32 %v318_v19, %v598_v42  ;;  %v358_v24 = vadd.f32 %v357_v16, %v324_v13  ;;  %v338_v42 = vadd.f32 %v337_v28, %v336_v21 }
 0x291   :  { %v344_v44 = vadd.f32 %v343_v35, %v342_v36 }
 0x292   :  { %v331_v23 = vrot.slane %v330_v15, 1  ;;  %v369_v26 = vrot.slane %v326_v25, 4  ;;  %v359_v33 = vrot.slane %v358_v24, 2 }
 0x294   :  { %v332_v31 = vadd.f32 %v331_v23, %v330_v15  ;;  %v370_v34 = vadd.f32 %v369_v26, %v326_v25  ;;  %v360_v41 = vadd.f32 %v359_v33, %v358_v24 }
 0x296   :  { %v383_v39 = vsel %vm215_vm1, %v338_v42, %v332_v31  ;;  %v371_v43 = vrot.slane %v370_v34, 2  ;;  %v361_v49 = vrot.slane %v360_v41, 1 }
 0x297   :  { %v384_v47 = vsel %vm217_vm2, %v344_v44, %v383_v39 }
 0x298   :  { %v443_v52 = vpop.eup %442  ;;  %v372_v50 = vadd.f32 %v371_v43, %v370_v34 }
 0x299   :  { %v399_v9 = vmul.f32 %v443_v52, %v397_v51  ;;  %v366_v51 = vadd.f32 %v365_v45, %v364_v37 }
 0x29b   :  { %v400_v53 = vsub.f32 2.0, %v399_v9  ;;  %v356_v9 = vadd.f32 %v355_v46, %v354_v38  ;;  %v367_v55 = vrot.slane %v366_v51, 1 }
 0x29d   :  { %v401_v54 = vmul.f32 %v443_v52, %v400_v53  ;;  %v385_v52 = vsel %vm219_vm3, %v350_v48, %v384_v47  ;;  %v362_v53 = vadd.f32 %v361_v49, %v360_v41  ;;  %v368_v58 = vadd.f32 %v367_v55, %v366_v51 }
 0x29e   :  { %v386_v56 = vsel %vm221_vm4, %v356_v9, %v385_v52 }
 0x29f   :  { %405 = vperm.xlu0 %436, %v401_v54   ;;  %v373_v54 = vrot.slane %v372_v50, 1  ;;  %v387_v3 = vsel %vm223_vm5, %v362_v53, %v386_v56 }
 0x2a0   :  { %v388_v60 = vsel %vm225_vm6, %v368_v58, %v387_v3 }
 0x2a1   :  { %v374_v57 = vadd.f32 %v373_v54, %v372_v50 }
 0x2a3   :  { %v389_v61 = vsel %vm227_vm7, %v374_v57, %v388_v60 }
 0x2a4   :  { %v391_v63 = vadd.f32 %v389_v61, %v262_v62 }
 0x31e   :  { %v406_v0 = vpop.permute.xlu0 %405 }
 0x31f   :  { %v408_v1 = vmul.f32 %v406_v0, %v391_v63 }
 0x321   :  { %409 = vst [vmem:[#allocation10] sm:$0xff] %v408_v1 }
 0x322   :  { %499 = shalt.err (!%p496_p6)
}
 0x323   :  { %s500_s10 = scalar_lea.hbm %s653_s2, 128 }
 0x324   :  { %p501_p7 = scmp.ne.s32.totalorder %s653_s2, %s500_s10  ;;  %p504_p8 = scmp.lt.u32.totalorder %s500_s10, %s653_s2 }
 0x326   :  { %p506_p9 = pnand %p504_p8, %p501_p7 }
 0x328   :  { %509 = shalt.err (!%p506_p9)
}
 0x329   :  { %419 = dma.vmem_to_hbm [thread:$0]  %s417_s6, 128, %s653_s2, [#allocation7]  }
 0x32a   :  { %514 = dma.done.wait [#allocation7], 128  }
 0x32b   :  { %515 = vsyncadd [#allocation7], 4294967168 }
 0x32c   :  { %423 = vsyncpa [#allocation6], 1 }
 0x32d   :  { %424 = vsyncpa [#allocation9], 1 }
 0x32e   :  { %425 = vsyncpa [#allocation7], 1 }

</bundles_post_ra>
